<compile_context>
chip_gen: v7x
topology: tpu7x:2x2x1
jax: 0.10.0
libtpu: 0.0.40
codegen_flags: <defaults>
</compile_context>

<pallas_src>
import functools
import math

import numpy as np
import jax
import jax.numpy as jnp
from jax import lax
from jax.experimental import pallas as pl
from jax.experimental.pallas import tpu as pltpu

# ----------------------------- model config ---------------------------------
FEAT_TYPES = [
    ("real", 0.0, 1.0),
    ("positive_real", 0.0, 1.0),
    ("count", 0.0, 10.0),
    ("categorical", 0.0, 3.0),
    ("ordinal", 1.0, 5.0),
]
HIDDEN_SIZES = [32, 16]
LATENT_DIM = 8
N_MIX = 4
N_FEAT = len(FEAT_TYPES)

LOG_IDX = [i for i, (t, _, _) in enumerate(FEAT_TYPES)
           if t in ("positive_real", "count")]
BN_IDX = [i for i, (t, _, _) in enumerate(FEAT_TYPES)
          if t in ("real", "positive_real")]

# per-feature encoding layout: (feature_dim, kind, enc_offset, enc_len)
ENC_LAYOUT = []
_off = 0
for _d, (_t, _fmin, _fmax) in enumerate(FEAT_TYPES):
    if _t == "categorical":
        _n = int(_fmax) + 1
        ENC_LAYOUT.append((_d, "cat", _off, _n))
    elif _t == "ordinal":
        _n = int(_fmax - _fmin + 1)
        ENC_LAYOUT.append((_d, "ord", _off, _n))
    else:
        _n = 1
        ENC_LAYOUT.append((_d, "pass", _off, _n))
    _off += _n
ENC_SIZE = _off  # 12 for the config above


# ------------------------- packed weight-slab layout -------------------------
def _align8(n):
    return ((n + 7) // 8) * 8


def _weight_slab_layout():
    """Row layout of the single packed weight slab (8-sublane aligned)."""
    layout = {}
    row = 0

    def add(name, nrows, ncols, align=True):
        nonlocal row
        if align:
            row = _align8(row)
        layout[name] = (row, nrows, ncols)
        row += nrows

    h0 = HIDDEN_SIZES[0]
    add("Wa", ENC_SIZE, N_MIX + h0)              # [Wm | W_hidden0]
    for i in range(1, len(HIDDEN_SIZES)):
        add(f"W{i}", HIDDEN_SIZES[i - 1], HIDDEN_SIZES[i])
    add("Wc", HIDDEN_SIZES[-1], 2 * LATENT_DIM)  # [Wmean_h | Wlogvar_h]
    add("Wd", N_MIX, 2 * LATENT_DIM)             # [Wmean_mix | Wlogvar_mix]
    add("ba", 1, N_MIX + h0)                     # [bm | b_hidden0]
    for i in range(1, len(HIDDEN_SIZES)):
        add(f"b{i}", 1, HIDDEN_SIZES[i], align=False)
    add("bc", 1, 2 * LATENT_DIM, align=False)    # [bmean | blogvar]

    total_rows = _align8(row)
    width = max(c for (_, _, c) in layout.values())
    return layout, total_rows, width


SLAB_LAYOUT, SLAB_ROWS, SLAB_COLS = _weight_slab_layout()

# packed output slab lanes: [mean | std | dists | mix | observed]
OUT_MEAN = 0
OUT_STD = OUT_MEAN + LATENT_DIM
OUT_DISTS = OUT_STD + LATENT_DIM
OUT_MIX = OUT_DISTS + N_MIX
OUT_OBS = OUT_MIX + N_MIX
OUT_W = OUT_OBS + N_FEAT


# ------------------------------ Pallas kernel --------------------------------
def _leaky_relu(x):
    return jnp.where(x > 0, x, 0.01 * x)


def hi_encoder_kernel(xg_ref, w_ref, out_ref):
    B = xg_ref.shape[0]

    def wslice(name):
        r, n, c = SLAB_LAYOUT[name]
        return w_ref[r:r + n, 0:c]

    x_raw = xg_ref[:, 0:N_FEAT]                     # raw input (may hold NaN)
    gumbel = xg_ref[:, N_FEAT:N_FEAT + N_MIX]       # gumbel noise (tau = 1)

    # ---- normalize(): NaN -> 0 + observed mask ------------------------------
    observed = x_raw == x_raw                       # ~isnan
    x0 = jnp.where(observed, x_raw, 0.0)

    colf = lax.broadcasted_iota(jnp.int32, (B, N_FEAT), 1)
    log_mask = functools.reduce(jnp.logical_or, [colf == i for i in LOG_IDX])
    bn_mask = functools.reduce(jnp.logical_or, [colf == i for i in BN_IDX])

    # log-transform positive_real / count columns (applied to imputed zeros
    # too, matching the PyTorch reference)
    x1 = jnp.where(log_mask, jnp.log(jnp.maximum(x0, 0.0) + 1e-8), x0)

    # training-mode BatchNorm1d (affine=False, biased variance, eps=1e-5),
    # stats over the zero-imputed batch exactly like the reference
    mu = jnp.mean(x1, axis=0, keepdims=True)
    var_bn = jnp.mean((x1 - mu) * (x1 - mu), axis=0, keepdims=True)
    normed = (x1 - mu) * lax.rsqrt(var_bn + 1e-5)
    # only real / positive_real columns keep the batch-normed values
    xn = jnp.where(bn_mask, normed, x1)

    # ---- categorical_encode(): build (B, ENC_SIZE) with iota selects --------
    cole = lax.broadcasted_iota(jnp.int32, (B, ENC_SIZE), 1).astype(jnp.float32)
    x_enc = jnp.zeros((B, ENC_SIZE), jnp.float32)
    for d, kind, off, n in ENC_LAYOUT:
        val = xn[:, d:d + 1]                        # (B, 1)
        in_range = (cole >= off) & (cole < off + n)
        if kind == "pass":
            x_enc = x_enc + jnp.where(in_range, val, 0.0)
        elif kind == "cat":                         # F.one_hot(x.long())
            cls = jnp.floor(val)
            x_enc = x_enc + jnp.where(in_range & (cole - off == cls), 1.0, 0.0)
        else:                                       # thermometer: arange(n) <= x
            x_enc = x_enc + jnp.where(in_range & (cole - off <= val), 1.0, 0.0)

    # ---- merged matmul #1: [pi | h1] = x_enc @ [Wm | W1] + [bm | b1] ---------
    pih = (jnp.dot(x_enc, wslice("Wa"), preferred_element_type=jnp.float32)
           + wslice("ba"))
    pi = pih[:, 0:N_MIX]
    h = _leaky_relu(pih[:, N_MIX:N_MIX + HIDDEN_SIZES[0]])

    # remaining hidden layers (Linear + LeakyReLU)
    for i in range(1, len(HIDDEN_SIZES)):
        h = _leaky_relu(
            jnp.dot(h, wslice(f"W{i}"), preferred_element_type=jnp.float32)
            + wslice(f"b{i}"))

    # ---- softmax over mixture logits (EUP reciprocal) ------------------------
    pmax = jnp.max(pi, axis=-1, keepdims=True)
    e = jnp.exp(pi - pmax)
    dists = e * pl.reciprocal(jnp.sum(e, axis=-1, keepdims=True), approx=True)

    # ---- hard gumbel-softmax: strictly one-hot (ties -> lowest index) --------
    z = pi + gumbel
    colm = lax.broadcasted_iota(jnp.int32, (B, N_MIX), 1).astype(jnp.float32)
    zmax = jnp.max(z, axis=-1, keepdims=True)
    cand = jnp.where(z >= zmax, colm, float(N_MIX))
    amin = jnp.min(cand, axis=-1, keepdims=True)
    mix = (colm == amin).astype(jnp.float32)

    # ---- merged matmul #2: [mean | log_var] ----------------------------------
    ml = (jnp.dot(h, wslice("Wc"), preferred_element_type=jnp.float32)
          + jnp.dot(mix, wslice("Wd"), preferred_element_type=jnp.float32)
          + wslice("bc"))
    mean = ml[:, 0:LATENT_DIM]
    log_var = ml[:, LATENT_DIM:2 * LATENT_DIM]
    var_z = jnp.clip(jnp.exp(log_var), 1e-6, 1e6)
    std = jnp.sqrt(var_z)

    # ---- single packed output slab (one writeback DMA) -----------------------
    out_ref[:, OUT_MEAN:OUT_STD] = mean
    out_ref[:, OUT_STD:OUT_DISTS] = std
    out_ref[:, OUT_DISTS:OUT_MIX] = dists
    out_ref[:, OUT_MIX:OUT_OBS] = mix
    out_ref[:, OUT_OBS:OUT_W] = observed.astype(jnp.float32)


# ------------------------------- JAX wrapper ---------------------------------
def hi_encoder_forward(x_raw, gumbel, w_slab):
    B = x_raw.shape[0]
    xg = jnp.concatenate([x_raw, gumbel], axis=1)   # one activation slab
    vmem = pl.BlockSpec(memory_space=pltpu.MemorySpace.VMEM)
    out = pl.pallas_call(
        hi_encoder_kernel,
        out_shape=jax.ShapeDtypeStruct((B, OUT_W), jnp.float32),
        in_specs=[vmem, vmem],
        out_specs=vmem,
    )(xg, w_slab)
    mean = out[:, OUT_MEAN:OUT_STD]
    std = out[:, OUT_STD:OUT_DISTS]
    dists = out[:, OUT_DISTS:OUT_MIX]
    mix = out[:, OUT_MIX:OUT_OBS]
    observed = out[:, OUT_OBS:OUT_W] > 0.5
    return mean, std, dists, mix, observed


# --------------------------- parameter construction --------------------------
def _linear(key, in_dim, out_dim):
    kw, kb = jax.random.split(key)
    bound = 1.0 / math.sqrt(in_dim)
    w = jax.random.uniform(kw, (in_dim, out_dim), jnp.float32, -bound, bound)
    b = jax.random.uniform(kb, (out_dim,), jnp.float32, -bound, bound)
    return w, b


def build_weight_slab(key):
    n_hidden = len(HIDDEN_SIZES)
    keys = jax.random.split(key, n_hidden + 3)
    wm, bm = _linear(keys[0], ENC_SIZE, N_MIX)                    # mixture_model
    hidden = []
    arch = [ENC_SIZE] + HIDDEN_SIZES
    for i, (din, dout) in enumerate(zip(arch[:-1], arch[1:])):
        hidden.append(_linear(keys[1 + i], din, dout))            # hidden MLP
    h_out = arch[-1]
    wmean, bmean = _linear(keys[-2], h_out + N_MIX, LATENT_DIM)   # mean head
    wlv, blv = _linear(keys[-1], h_out + N_MIX, LATENT_DIM)       # log_var head
    # TODO(synk): p_mean / p_log_var exist in HIEncoder.__init__ but are never
    # used in forward(); they are intentionally not materialized here.

    slab = np.zeros((SLAB_ROWS, SLAB_COLS), np.float32)

    def put(name, mat):
        r, n, c = SLAB_LAYOUT[name]
        slab[r:r + n, 0:c] = np.asarray(mat, np.float32).reshape(n, c)

    w1, b1 = hidden[0]
    put("Wa", jnp.concatenate([wm, w1], axis=1))
    put("ba", jnp.concatenate([bm, b1])[None, :])
    for i in range(1, n_hidden):
        wi, bi = hidden[i]
        put(f"W{i}", wi)
        put(f"b{i}", bi[None, :])
    put("Wc", jnp.concatenate([wmean[:h_out], wlv[:h_out]], axis=1))
    put("Wd", jnp.concatenate([wmean[h_out:], wlv[h_out:]], axis=1))
    put("bc", jnp.concatenate([bmean, blv])[None, :])
    return jnp.asarray(slab)


# ---------------------------------- main -------------------------------------
if __name__ == "__main__":
    key = jax.random.PRNGKey(0)
    k1, k2, k3, k4, k5, kg, kp = jax.random.split(key, 7)
    B = 8

    real = jax.random.normal(k1, (B,), jnp.float32)
    pos = jnp.abs(jax.random.normal(k2, (B,), jnp.float32)) + 0.1
    count = jax.random.randint(k3, (B,), 0, 11).astype(jnp.float32)
    cat = jax.random.randint(k4, (B,), 0, 4).astype(jnp.float32)
    ordn = jax.random.randint(k5, (B,), 1, 6).astype(jnp.float32)
    x = jnp.stack([real, pos, count, cat, ordn], axis=1)
    # a couple of missing values
    x = x.at[0, 0].set(jnp.nan).at[1, 1].set(jnp.nan)

    # gumbel noise for the hard gumbel-softmax (tau = 1)
    u = jax.random.uniform(kg, (B, N_MIX), jnp.float32, 1e-6, 1.0 - 1e-6)
    gumbel = -jnp.log(-jnp.log(u))

    w_slab = build_weight_slab(kp)

    fwd = jax.jit(hi_encoder_forward)
    mean, std, dists, mix, observed = fwd(x, gumbel, w_slab)
    jax.block_until_ready((mean, std, dists, mix, observed))

    assert mean.shape == (B, LATENT_DIM)
    assert std.shape == (B, LATENT_DIM)
    assert dists.shape == (B, N_MIX)
    assert mix.shape == (B, N_MIX)
    assert observed.shape == (B, N_FEAT)
    assert bool(jnp.all(jnp.isfinite(mean)))
    assert bool(jnp.all(std > 0))
    # softmax uses the approximate EUP reciprocal -> slightly looser tolerance
    assert bool(jnp.allclose(jnp.sum(dists, axis=1), 1.0, atol=1e-2))
    assert bool(jnp.all(dists >= 0))
    # hard gumbel-softmax must be strictly one-hot
    assert bool(jnp.all((mix == 0.0) | (mix == 1.0)))
    assert bool(jnp.allclose(jnp.sum(mix, axis=1), 1.0, atol=1e-6))
    # NaN entries are flagged as unobserved, everything else observed
    assert not bool(observed[0, 0]) and not bool(observed[1, 1])
    assert bool(jnp.all(observed[2:]))

    print("KERNEL_OK")
</pallas_src>

<mosaic_0001>
module attributes {stable_mosaic.version = 11 : i64} {
  func.func @hi_encoder_kernel(%arg0: memref<8x9xf32, #tpu.memory_space<vmem>>, %arg1: memref<80x36xf32, #tpu.memory_space<vmem>>, %arg2: memref<8x29xf32, #tpu.memory_space<vmem>>) attributes {dimension_semantics = [], scalar_prefetch = 0 : i64, scratch_operands = 0 : i64, tpu.core_type = #tpu.core_type<tc>} {
    %c0 = arith.constant 0 : index
    %c0_0 = arith.constant 0 : index
    %0 = vector.load %arg0[%c0, %c0_0] : memref<8x9xf32, #tpu.memory_space<vmem>>, vector<8x5xf32>
    %c0_1 = arith.constant 0 : index
    %c5 = arith.constant 5 : index
    %1 = vector.load %arg0[%c0_1, %c5] : memref<8x9xf32, #tpu.memory_space<vmem>>, vector<8x4xf32>
    %2 = arith.cmpf oeq, %0, %0 : vector<8x5xf32>
    %cst = arith.constant 0.000000e+00 : f32
    %3 = vector.broadcast %cst : f32 to vector<8x5xf32>
    %4 = arith.select %2, %0, %3 : vector<8x5xi1>, vector<8x5xf32>
    %5 = tpu.iota {dimensions = array<i32: 1>} : vector<8x5xi32>
    %c1_i32 = arith.constant 1 : i32
    %6 = vector.broadcast %c1_i32 : i32 to vector<8x5xi32>
    %7 = arith.cmpi eq, %5, %6 : vector<8x5xi32>
    %c2_i32 = arith.constant 2 : i32
    %8 = vector.broadcast %c2_i32 : i32 to vector<8x5xi32>
    %9 = arith.cmpi eq, %5, %8 : vector<8x5xi32>
    %10 = arith.ori %7, %9 : vector<8x5xi1>
    %c0_i32 = arith.constant 0 : i32
    %11 = vector.broadcast %c0_i32 : i32 to vector<8x5xi32>
    %12 = arith.cmpi eq, %5, %11 : vector<8x5xi32>
    %c1_i32_2 = arith.constant 1 : i32
    %13 = vector.broadcast %c1_i32_2 : i32 to vector<8x5xi32>
    %14 = arith.cmpi eq, %5, %13 : vector<8x5xi32>
    %15 = arith.ori %12, %14 : vector<8x5xi1>
    %cst_3 = arith.constant 0.000000e+00 : f32
    %16 = vector.broadcast %cst_3 : f32 to vector<8x5xf32>
    %17 = arith.maximumf %4, %16 : vector<8x5xf32>
    %cst_4 = arith.constant 9.99999993E-9 : f32
    %18 = vector.broadcast %cst_4 : f32 to vector<8x5xf32>
    %19 = arith.addf %17, %18 : vector<8x5xf32>
    %20 = math.log %19 : vector<8x5xf32>
    %21 = arith.select %10, %20, %4 : vector<8x5xi1>, vector<8x5xf32>
    %cst_5 = arith.constant dense<0.000000e+00> : vector<5xf32>
    %22 = vector.multi_reduction <add>, %21, %cst_5 [0] : vector<8x5xf32> to vector<5xf32>
    %23 = vector.shape_cast %22 : vector<5xf32> to vector<1x5xf32>
    %cst_6 = arith.constant 8.000000e+00 : f32
    %24 = vector.broadcast %cst_6 : f32 to vector<1x5xf32>
    %25 = arith.divf %23, %24 : vector<1x5xf32>
    %26 = vector.broadcast %25 : vector<1x5xf32> to vector<8x5xf32>
    %27 = arith.subf %21, %26 : vector<8x5xf32>
    %28 = vector.broadcast %25 : vector<1x5xf32> to vector<8x5xf32>
    %29 = arith.subf %21, %28 : vector<8x5xf32>
    %30 = arith.mulf %27, %29 : vector<8x5xf32>
    %cst_7 = arith.constant dense<0.000000e+00> : vector<5xf32>
    %31 = vector.multi_reduction <add>, %30, %cst_7 [0] : vector<8x5xf32> to vector<5xf32>
    %32 = vector.shape_cast %31 : vector<5xf32> to vector<1x5xf32>
    %cst_8 = arith.constant 8.000000e+00 : f32
    %33 = vector.broadcast %cst_8 : f32 to vector<1x5xf32>
    %34 = arith.divf %32, %33 : vector<1x5xf32>
    %35 = vector.broadcast %25 : vector<1x5xf32> to vector<8x5xf32>
    %36 = arith.subf %21, %35 : vector<8x5xf32>
    %cst_9 = arith.constant 9.99999974E-6 : f32
    %37 = vector.broadcast %cst_9 : f32 to vector<1x5xf32>
    %38 = arith.addf %34, %37 : vector<1x5xf32>
    %39 = math.rsqrt %38 : vector<1x5xf32>
    %40 = vector.broadcast %39 : vector<1x5xf32> to vector<8x5xf32>
    %41 = arith.mulf %36, %40 : vector<8x5xf32>
    %42 = arith.select %15, %41, %21 : vector<8x5xi1>, vector<8x5xf32>
    %43 = tpu.iota {dimensions = array<i32: 1>} : vector<8x12xi32>
    %44 = arith.sitofp %43 : vector<8x12xi32> to vector<8x12xf32>
    %cst_10 = arith.constant 0.000000e+00 : f32
    %45 = vector.broadcast %cst_10 : f32 to vector<8x12xf32>
    %46 = vector.extract_strided_slice %42 {offsets = [0, 0], sizes = [8, 1], strides = [1, 1]} : vector<8x5xf32> to vector<8x1xf32>
    %cst_11 = arith.constant 0.000000e+00 : f32
    %47 = vector.broadcast %cst_11 : f32 to vector<8x12xf32>
    %48 = arith.cmpf oge, %44, %47 : vector<8x12xf32>
    %cst_12 = arith.constant 1.000000e+00 : f32
    %49 = vector.broadcast %cst_12 : f32 to vector<8x12xf32>
    %50 = arith.cmpf olt, %44, %49 : vector<8x12xf32>
    %51 = arith.andi %48, %50 : vector<8x12xi1>
    %cst_13 = arith.constant 0.000000e+00 : f32
    %52 = vector.shape_cast %46 : vector<8x1xf32> to vector<8x1xf32>
    %53 = vector.broadcast %52 : vector<8x1xf32> to vector<8x12xf32>
    %54 = vector.broadcast %cst_13 : f32 to vector<8x12xf32>
    %55 = arith.select %51, %53, %54 : vector<8x12xi1>, vector<8x12xf32>
    %56 = arith.addf %45, %55 : vector<8x12xf32>
    %57 = vector.extract_strided_slice %42 {offsets = [0, 1], sizes = [8, 1], strides = [1, 1]} : vector<8x5xf32> to vector<8x1xf32>
    %cst_14 = arith.constant 1.000000e+00 : f32
    %58 = vector.broadcast %cst_14 : f32 to vector<8x12xf32>
    %59 = arith.cmpf oge, %44, %58 : vector<8x12xf32>
    %cst_15 = arith.constant 2.000000e+00 : f32
    %60 = vector.broadcast %cst_15 : f32 to vector<8x12xf32>
    %61 = arith.cmpf olt, %44, %60 : vector<8x12xf32>
    %62 = arith.andi %59, %61 : vector<8x12xi1>
    %cst_16 = arith.constant 0.000000e+00 : f32
    %63 = vector.shape_cast %57 : vector<8x1xf32> to vector<8x1xf32>
    %64 = vector.broadcast %63 : vector<8x1xf32> to vector<8x12xf32>
    %65 = vector.broadcast %cst_16 : f32 to vector<8x12xf32>
    %66 = arith.select %62, %64, %65 : vector<8x12xi1>, vector<8x12xf32>
    %67 = arith.addf %56, %66 : vector<8x12xf32>
    %68 = vector.extract_strided_slice %42 {offsets = [0, 2], sizes = [8, 1], strides = [1, 1]} : vector<8x5xf32> to vector<8x1xf32>
    %cst_17 = arith.constant 2.000000e+00 : f32
    %69 = vector.broadcast %cst_17 : f32 to vector<8x12xf32>
    %70 = arith.cmpf oge, %44, %69 : vector<8x12xf32>
    %cst_18 = arith.constant 3.000000e+00 : f32
    %71 = vector.broadcast %cst_18 : f32 to vector<8x12xf32>
    %72 = arith.cmpf olt, %44, %71 : vector<8x12xf32>
    %73 = arith.andi %70, %72 : vector<8x12xi1>
    %cst_19 = arith.constant 0.000000e+00 : f32
    %74 = vector.shape_cast %68 : vector<8x1xf32> to vector<8x1xf32>
    %75 = vector.broadcast %74 : vector<8x1xf32> to vector<8x12xf32>
    %76 = vector.broadcast %cst_19 : f32 to vector<8x12xf32>
    %77 = arith.select %73, %75, %76 : vector<8x12xi1>, vector<8x12xf32>
    %78 = arith.addf %67, %77 : vector<8x12xf32>
    %79 = vector.extract_strided_slice %42 {offsets = [0, 3], sizes = [8, 1], strides = [1, 1]} : vector<8x5xf32> to vector<8x1xf32>
    %cst_20 = arith.constant 3.000000e+00 : f32
    %80 = vector.broadcast %cst_20 : f32 to vector<8x12xf32>
    %81 = arith.cmpf oge, %44, %80 : vector<8x12xf32>
    %cst_21 = arith.constant 7.000000e+00 : f32
    %82 = vector.broadcast %cst_21 : f32 to vector<8x12xf32>
    %83 = arith.cmpf olt, %44, %82 : vector<8x12xf32>
    %84 = arith.andi %81, %83 : vector<8x12xi1>
    %85 = math.floor %79 : vector<8x1xf32>
    %cst_22 = arith.constant 3.000000e+00 : f32
    %86 = vector.broadcast %cst_22 : f32 to vector<8x12xf32>
    %87 = arith.subf %44, %86 : vector<8x12xf32>
    %88 = vector.broadcast %85 : vector<8x1xf32> to vector<8x12xf32>
    %89 = arith.cmpf oeq, %87, %88 : vector<8x12xf32>
    %90 = arith.andi %84, %89 : vector<8x12xi1>
    %cst_23 = arith.constant 1.000000e+00 : f32
    %cst_24 = arith.constant 0.000000e+00 : f32
    %91 = vector.broadcast %cst_23 : f32 to vector<8x12xf32>
    %92 = vector.broadcast %cst_24 : f32 to vector<8x12xf32>
    %93 = arith.select %90, %91, %92 : vector<8x12xi1>, vector<8x12xf32>
    %94 = arith.addf %78, %93 : vector<8x12xf32>
    %95 = vector.extract_strided_slice %42 {offsets = [0, 4], sizes = [8, 1], strides = [1, 1]} : vector<8x5xf32> to vector<8x1xf32>
    %cst_25 = arith.constant 7.000000e+00 : f32
    %96 = vector.broadcast %cst_25 : f32 to vector<8x12xf32>
    %97 = arith.cmpf oge, %44, %96 : vector<8x12xf32>
    %cst_26 = arith.constant 1.200000e+01 : f32
    %98 = vector.broadcast %cst_26 : f32 to vector<8x12xf32>
    %99 = arith.cmpf olt, %44, %98 : vector<8x12xf32>
    %100 = arith.andi %97, %99 : vector<8x12xi1>
    %cst_27 = arith.constant 7.000000e+00 : f32
    %101 = vector.broadcast %cst_27 : f32 to vector<8x12xf32>
    %102 = arith.subf %44, %101 : vector<8x12xf32>
    %103 = vector.broadcast %95 : vector<8x1xf32> to vector<8x12xf32>
    %104 = arith.cmpf ole, %102, %103 : vector<8x12xf32>
    %105 = arith.andi %100, %104 : vector<8x12xi1>
    %cst_28 = arith.constant 1.000000e+00 : f32
    %cst_29 = arith.constant 0.000000e+00 : f32
    %106 = vector.broadcast %cst_28 : f32 to vector<8x12xf32>
    %107 = vector.broadcast %cst_29 : f32 to vector<8x12xf32>
    %108 = arith.select %105, %106, %107 : vector<8x12xi1>, vector<8x12xf32>
    %109 = arith.addf %94, %108 : vector<8x12xf32>
    %c0_30 = arith.constant 0 : index
    %c0_31 = arith.constant 0 : index
    %110 = vector.load %arg1[%c0_30, %c0_31] : memref<80x36xf32, #tpu.memory_space<vmem>>, vector<12x36xf32>
    %cst_32 = arith.constant dense<0.000000e+00> : vector<8x36xf32>
    %111 = tpu.matmul %109, %110, %cst_32 {dimension_numbers = #tpu.dot_dimension_numbers<[1], [0], [0], [1], [0, 0, 1, 1], [], []>} : vector<8x12xf32>, vector<12x36xf32>, vector<8x36xf32> -> vector<8x36xf32>
    %c72 = arith.constant 72 : index
    %c0_33 = arith.constant 0 : index
    %112 = vector.load %arg1[%c72, %c0_33] : memref<80x36xf32, #tpu.memory_space<vmem>>, vector<1x36xf32>
    %113 = vector.broadcast %112 : vector<1x36xf32> to vector<8x36xf32>
    %114 = arith.addf %111, %113 : vector<8x36xf32>
    %115 = vector.extract_strided_slice %114 {offsets = [0, 0], sizes = [8, 4], strides = [1, 1]} : vector<8x36xf32> to vector<8x4xf32>
    %116 = vector.extract_strided_slice %114 {offsets = [0, 4], sizes = [8, 32], strides = [1, 1]} : vector<8x36xf32> to vector<8x32xf32>
    %cst_34 = arith.constant 0.000000e+00 : f32
    %117 = vector.broadcast %cst_34 : f32 to vector<8x32xf32>
    %118 = arith.cmpf ogt, %116, %117 : vector<8x32xf32>
    %cst_35 = arith.constant 0.00999999977 : f32
    %119 = vector.broadcast %cst_35 : f32 to vector<8x32xf32>
    %120 = arith.mulf %119, %116 : vector<8x32xf32>
    %121 = arith.select %118, %116, %120 : vector<8x32xi1>, vector<8x32xf32>
    %c16 = arith.constant 16 : index
    %c0_36 = arith.constant 0 : index
    %122 = vector.load %arg1[%c16, %c0_36] : memref<80x36xf32, #tpu.memory_space<vmem>>, vector<32x16xf32>
    %cst_37 = arith.constant dense<0.000000e+00> : vector<8x16xf32>
    %123 = tpu.matmul %121, %122, %cst_37 {dimension_numbers = #tpu.dot_dimension_numbers<[1], [0], [0], [1], [0, 0, 1, 1], [], []>} : vector<8x32xf32>, vector<32x16xf32>, vector<8x16xf32> -> vector<8x16xf32>
    %c73 = arith.constant 73 : index
    %c0_38 = arith.constant 0 : index
    %124 = vector.load %arg1[%c73, %c0_38] : memref<80x36xf32, #tpu.memory_space<vmem>>, vector<1x16xf32>
    %125 = vector.broadcast %124 : vector<1x16xf32> to vector<8x16xf32>
    %126 = arith.addf %123, %125 : vector<8x16xf32>
    %cst_39 = arith.constant 0.000000e+00 : f32
    %127 = vector.broadcast %cst_39 : f32 to vector<8x16xf32>
    %128 = arith.cmpf ogt, %126, %127 : vector<8x16xf32>
    %cst_40 = arith.constant 0.00999999977 : f32
    %129 = vector.broadcast %cst_40 : f32 to vector<8x16xf32>
    %130 = arith.mulf %129, %126 : vector<8x16xf32>
    %131 = arith.select %128, %126, %130 : vector<8x16xi1>, vector<8x16xf32>
    %cst_41 = arith.constant dense<0xFF800000> : vector<8xf32>
    %132 = vector.multi_reduction <maximumf>, %115, %cst_41 [1] : vector<8x4xf32> to vector<8xf32>
    %133 = vector.shape_cast %132 : vector<8xf32> to vector<8x1xf32>
    %134 = vector.broadcast %133 : vector<8x1xf32> to vector<8x4xf32>
    %135 = arith.subf %115, %134 : vector<8x4xf32>
    %136 = math.exp %135 : vector<8x4xf32>
    %cst_42 = arith.constant dense<0.000000e+00> : vector<8xf32>
    %137 = vector.multi_reduction <add>, %136, %cst_42 [1] : vector<8x4xf32> to vector<8xf32>
    %138 = vector.shape_cast %137 : vector<8xf32> to vector<8x1xf32>
    %139 = tpu.reciprocal %138 {approx = true} : vector<8x1xf32> -> vector<8x1xf32>
    %140 = vector.broadcast %139 : vector<8x1xf32> to vector<8x4xf32>
    %141 = arith.mulf %136, %140 : vector<8x4xf32>
    %142 = arith.addf %115, %1 : vector<8x4xf32>
    %143 = tpu.iota {dimensions = array<i32: 1>} : vector<8x4xi32>
    %144 = arith.sitofp %143 : vector<8x4xi32> to vector<8x4xf32>
    %cst_43 = arith.constant dense<0xFF800000> : vector<8xf32>
    %145 = vector.multi_reduction <maximumf>, %142, %cst_43 [1] : vector<8x4xf32> to vector<8xf32>
    %146 = vector.shape_cast %145 : vector<8xf32> to vector<8x1xf32>
    %147 = vector.broadcast %146 : vector<8x1xf32> to vector<8x4xf32>
    %148 = arith.cmpf oge, %142, %147 : vector<8x4xf32>
    %cst_44 = arith.constant 4.000000e+00 : f32
    %149 = vector.broadcast %cst_44 : f32 to vector<8x4xf32>
    %150 = arith.select %148, %144, %149 : vector<8x4xi1>, vector<8x4xf32>
    %cst_45 = arith.constant dense<0x7F800000> : vector<8xf32>
    %151 = vector.multi_reduction <minimumf>, %150, %cst_45 [1] : vector<8x4xf32> to vector<8xf32>
    %152 = vector.shape_cast %151 : vector<8xf32> to vector<8x1xf32>
    %153 = vector.broadcast %152 : vector<8x1xf32> to vector<8x4xf32>
    %154 = arith.cmpf oeq, %144, %153 : vector<8x4xf32>
    %155 = arith.extui %154 : vector<8x4xi1> to vector<8x4xi32>
    %156 = arith.sitofp %155 : vector<8x4xi32> to vector<8x4xf32>
    %c48 = arith.constant 48 : index
    %c0_46 = arith.constant 0 : index
    %157 = vector.load %arg1[%c48, %c0_46] : memref<80x36xf32, #tpu.memory_space<vmem>>, vector<16x16xf32>
    %cst_47 = arith.constant dense<0.000000e+00> : vector<8x16xf32>
    %158 = tpu.matmul %131, %157, %cst_47 {dimension_numbers = #tpu.dot_dimension_numbers<[1], [0], [0], [1], [0, 0, 1, 1], [], []>} : vector<8x16xf32>, vector<16x16xf32>, vector<8x16xf32> -> vector<8x16xf32>
    %c64 = arith.constant 64 : index
    %c0_48 = arith.constant 0 : index
    %159 = vector.load %arg1[%c64, %c0_48] : memref<80x36xf32, #tpu.memory_space<vmem>>, vector<4x16xf32>
    %cst_49 = arith.constant dense<0.000000e+00> : vector<8x16xf32>
    %160 = tpu.matmul %156, %159, %cst_49 {dimension_numbers = #tpu.dot_dimension_numbers<[1], [0], [0], [1], [0, 0, 1, 1], [], []>} : vector<8x4xf32>, vector<4x16xf32>, vector<8x16xf32> -> vector<8x16xf32>
    %161 = arith.addf %158, %160 : vector<8x16xf32>
    %c74 = arith.constant 74 : index
    %c0_50 = arith.constant 0 : index
    %162 = vector.load %arg1[%c74, %c0_50] : memref<80x36xf32, #tpu.memory_space<vmem>>, vector<1x16xf32>
    %163 = vector.broadcast %162 : vector<1x16xf32> to vector<8x16xf32>
    %164 = arith.addf %161, %163 : vector<8x16xf32>
    %165 = vector.extract_strided_slice %164 {offsets = [0, 0], sizes = [8, 8], strides = [1, 1]} : vector<8x16xf32> to vector<8x8xf32>
    %166 = vector.extract_strided_slice %164 {offsets = [0, 8], sizes = [8, 8], strides = [1, 1]} : vector<8x16xf32> to vector<8x8xf32>
    %167 = math.exp %166 : vector<8x8xf32>
    %cst_51 = arith.constant 9.99999997E-7 : f32
    %cst_52 = arith.constant 1.000000e+06 : f32
    %168 = vector.broadcast %cst_51 : f32 to vector<8x8xf32>
    %169 = arith.maximumf %168, %167 : vector<8x8xf32>
    %170 = vector.broadcast %cst_52 : f32 to vector<8x8xf32>
    %171 = arith.minimumf %170, %169 : vector<8x8xf32>
    %172 = math.sqrt %171 : vector<8x8xf32>
    %c0_53 = arith.constant 0 : index
    %c0_54 = arith.constant 0 : index
    %173 = vector.load %arg2[%c0_53, %c0_54] : memref<8x29xf32, #tpu.memory_space<vmem>>, vector<8x8xf32>
    tpu.vector_store %arg2[%c0_53, %c0_54], %165 {strides = array<i32>} : memref<8x29xf32, #tpu.memory_space<vmem>>, vector<8x8xf32>,
    %c0_55 = arith.constant 0 : index
    %c8 = arith.constant 8 : index
    %174 = vector.load %arg2[%c0_55, %c8] : memref<8x29xf32, #tpu.memory_space<vmem>>, vector<8x8xf32>
    tpu.vector_store %arg2[%c0_55, %c8], %172 {strides = array<i32>} : memref<8x29xf32, #tpu.memory_space<vmem>>, vector<8x8xf32>,
    %c0_56 = arith.constant 0 : index
    %c16_57 = arith.constant 16 : index
    %175 = vector.load %arg2[%c0_56, %c16_57] : memref<8x29xf32, #tpu.memory_space<vmem>>, vector<8x4xf32>
    tpu.vector_store %arg2[%c0_56, %c16_57], %141 {strides = array<i32>} : memref<8x29xf32, #tpu.memory_space<vmem>>, vector<8x4xf32>,
    %c0_58 = arith.constant 0 : index
    %c20 = arith.constant 20 : index
    %176 = vector.load %arg2[%c0_58, %c20] : memref<8x29xf32, #tpu.memory_space<vmem>>, vector<8x4xf32>
    tpu.vector_store %arg2[%c0_58, %c20], %156 {strides = array<i32>} : memref<8x29xf32, #tpu.memory_space<vmem>>, vector<8x4xf32>,
    %177 = arith.extui %2 : vector<8x5xi1> to vector<8x5xi32>
    %178 = arith.sitofp %177 : vector<8x5xi32> to vector<8x5xf32>
    %c0_59 = arith.constant 0 : index
    %c24 = arith.constant 24 : index
    %179 = vector.load %arg2[%c0_59, %c24] : memref<8x29xf32, #tpu.memory_space<vmem>>, vector<8x5xf32>
    tpu.vector_store %arg2[%c0_59, %c24], %178 {strides = array<i32>} : memref<8x29xf32, #tpu.memory_space<vmem>>, vector<8x5xf32>,
    return
  }
}

</mosaic_0001>

<bundles_post_ra>
// kernel: hi_encoder_forward.1
= control target key start
LH: loop header
LB: loop body
LE: loop exit
PB: predicated region body
PF: predicated region fallthrough
CT: control target
= control target key end

     0   :  { %v607_v0 = vmov 2   ;;  %v608_v1 = vmov 0   ;;  %v14_v6 = vlaneseq  ;;  %vm26_vm4 = vcmask 39936   ;;  %s616_s14 = smov 123   ;;  %s617_s25 = smov 124   ;;  %s752_s0 = inlined_call_operand.vmem [shape: f32[8,9], index: 0, kind: input, shape index: {}]   ;;  %s753_s1 = inlined_call_operand.vmem [shape: f32[80,36], index: 1, kind: input, shape index: {}]   ;;  %s754_s2 = inlined_call_operand.vmem [shape: f32[8,29], index: 2, kind: output, shape index: {}]  }
   0x1   :  { %591 = vset.pattern.permute.xlu1 %v607_v0  ;;  %589 = vset.pattern.permute.xlu0 %v608_v1  ;;  %v639_v2 = vld [vmem:[%s752_s0] sm:$0xff]  ;;  %v609_v34 = vmov 3   ;;  %v610_v35 = vmov 1   ;;  %v611_v36 = vmov 4   ;;  %v106_v38 = vld [vmem:[%s753_s1 + $0x8] sm:$0xf] }
   0x2   :  { %vm755_vm0 = vcmp.eq.f32.partialorder %v639_v2, %v639_v2  ;;  %v647_v7 = vand.u32 127, %v14_v6  ;;  %v105_v37 = vld [vmem:[%s753_s1] sm:$0xff]  ;;  %vm756_vm7 = vcmask 1043456   ;;  %v612_v40 = vmov 0.0|0.0   ;;  %v193_v59 = vld [vmem:[%s753_s1 + $0x10] sm:$0xff]  ;;  %v194_v60 = vld [vmem:[%s753_s1 + $0x18] sm:$0xff] }
   0x3   :  { %v13_v3 = vsel %vm755_vm0, %v639_v2, 0.0  ;;  %v563_v39 = vpack.c.bf16 %v106_v38, %v105_v37  ;;  %562 = vmatprep.subr.bf16.mxu0 %v612_v40  ;;  %vm613_vm8 = vmmov 1   ;;  %566 = vmatprep.subr.bf16.mxu1 %v612_v40  ;;  %v614_v41 = vmov 0.0   ;;  %v195_v61 = vld [vmem:[%s753_s1 + $0x20] sm:$0xff]  ;;  %v196_v63 = vld [vmem:[%s753_s1 + $0x28] sm:$0xff]  ;;  %s618_s4 = smov 20  }
   0x4   :  { %v21_v4 = vmax.f32 %v13_v3, 0.0  ;;  %vm16_vm1 = vcmp.eq.s32.totalorder %v647_v7, 1  ;;  %vm17_vm2 = vcmp.eq.s32.totalorder %v647_v7, 2  ;;  %vm19_vm5 = vcmp.eq.s32.totalorder %v647_v7, 0  ;;  %vm564_vm9 = vmpackc.low %vm756_vm7, %vm613_vm8  ;;  %v508_v1 = vld [vmem:[%s753_s1 + $0x48] ss:$0 sm:$0xff] }
   0x5   :  { %vm18_vm3 = vmor %vm16_vm1, %vm17_vm2  ;;  %565 = vmatpush3.bf16.msk.msra.mxu0 %vm564_vm9, %v563_v39  ;;  %vm757_vm10 = vmmov 0   ;;  %v672_v42 = vcvt.s32.f32 %v647_v7  ;;  %v567_v62 = vpack.c.bf16 %v194_v60, %v193_v59  ;;  %v570_v0 = vpack.c.bf16 %v196_v63, %v195_v61  ;;  %s619_s7 = smov 16   ;;  %s620_s8 = smov 24  }
   0x6   :  { %v22_v5 = vadd.f32 1e-08, %v21_v4  ;;  %vm20_vm6 = vmor %vm19_vm5, %vm16_vm1  ;;  %550 = vmatprep.subr.mxu0 %v614_v41  ;;  %536 = vmatprep.mubr.msk.f32.mxu0 %vm757_vm10, %v614_v41 }
   0x7   :  { %547 = vmatprep.mubr.msk.f32.mxu1 %vm757_vm10, %v614_v41  ;;  %vm51_vm11 = vcmp.ge.f32.partialorder %v672_v42, 0.0  ;;  %vm52_vm12 = vcmp.lt.f32.partialorder %v672_v42, 1.0  ;;  %vm61_vm13 = vcmp.ge.f32.partialorder %v672_v42, 1.0  ;;  %vm62_vm14 = vcmp.lt.f32.partialorder %v672_v42, 2.0  ;;  %568 = vmatpush3.bf16.msra.mxu1 %v567_v62 }
   0x8   :  { %595 = vlog2.f32 %v22_v5  ;;  %vm79_vm15 = vcmp.ge.f32.partialorder %v672_v42, 3.0  ;;  %vm80_vm1 = vcmp.lt.f32.partialorder %v672_v42, 7.0  ;;  %vm70_vm2 = vcmp.ge.f32.partialorder %v672_v42, 2.0  ;;  %vm63_vm5 = vmand %vm61_vm13, %vm62_vm14  ;;  %569 = vmatprep.subr.bf16.mxu1 %v612_v40 }
   0x9   :  { %v506_v45 = vadd.f32 -3.0, %v672_v42  ;;  %vm93_vm9 = vcmp.ge.f32.partialorder %v672_v42, 7.0  ;;  %vm94_vm7 = vcmp.lt.f32.partialorder %v672_v42, 12.0  ;;  %v507_v51 = vadd.f32 -7.0, %v672_v42 }
   0xa   :  { %vm112_vm14 = vcmask 97280  }
   0xb   :  { %571 = vmatpush3.bf16.msra.mxu1 %v570_v0 }
  0x12   :  { %v596_v8 = vpop.eup %595 }
  0x13   :  { %v24_v9 = vmul.f32 0.6931472, %v596_v8 }
  0x15   :  { %v25_v10 = vsel %vm18_vm3, %v24_v9, %v13_v3  ;;  %vm71_vm3 = vcmp.lt.f32.partialorder %v672_v42, 3.0 }
  0x16   :  { %v27_v11 = vsel %vm26_vm4, %v25_v10, 0.0  ;;  %vm72_vm8 = vmand %vm70_vm2, %vm71_vm3  ;;  %vm760_vm2 = vcmask 1043456  }
  0x17   :  { %v28_v12 = vrot.slane %v27_v11, 4 }
  0x19   :  { %v29_v13 = vadd.f32 %v28_v12, %v27_v11 }
  0x1b   :  { %v30_v14 = vrot.slane %v29_v13, 2 }
  0x1d   :  { %v31_v15 = vadd.f32 %v30_v14, %v29_v13 }
  0x1f   :  { %v32_v16 = vrot.slane %v31_v15, 1 }
  0x21   :  { %v33_v17 = vadd.f32 %v32_v16, %v31_v15 }
  0x23   :  { %v35_v18 = vmul.f32 0.125, %v33_v17 }
  0x25   :  { %v36_v19 = vsub.f32 %v25_v10, %v35_v18 }
  0x27   :  { %v37_v20 = vmul.f32 %v36_v19, %v36_v19 }
  0x29   :  { %v38_v21 = vsel %vm26_vm4, %v37_v20, 0.0  ;;  %vm53_vm4 = vmand %vm51_vm11, %vm52_vm12 }
  0x2a   :  { %v39_v22 = vrot.slane %v38_v21, 4  ;;  %vm95_vm11 = vmand %vm93_vm9, %vm94_vm7  ;;  %vm281_vm7 = vcmask 31744  }
  0x2c   :  { %v40_v23 = vadd.f32 %v39_v22, %v38_v21  ;;  %v309_v22 = vld [vmem:[%s753_s1 + $0x30] sm:$0xff] }
  0x2e   :  { %v41_v24 = vrot.slane %v40_v23, 2 }
  0x30   :  { %v42_v25 = vadd.f32 %v41_v24, %v40_v23  ;;  %v310_v23 = vld [vmem:[%s753_s1 + $0x38] sm:$0xff] }
  0x32   :  { %v43_v26 = vrot.slane %v42_v25, 1 }
  0x34   :  { %v44_v27 = vadd.f32 %v43_v26, %v42_v25  ;;  %v573_v25 = vpack.c.bf16 %v310_v23, %v309_v22 }
  0x36   :  { %v45_v28 = vmul.f32 0.125, %v44_v27  ;;  %v511_v27 = vld [vmem:[%s753_s1 + $0x49] ss:$0 sm:$0xff] }
  0x38   :  { %v46_v29 = vadd.f32 1e-05, %v45_v28 }
  0x3a   :  { %597 = vrsqrt.f32 %v46_v29 }
  0x44   :  { %v598_v30 = vpop.eup %597 }
  0x45   :  { %v48_v31 = vmul.f32 %v598_v30, %v36_v19  ;;  %v311_v19 = vld [vmem:[%s753_s1 + $0x40] sm:$0xf] }
  0x47   :  { %v49_v32 = vsel %vm20_vm6, %v48_v31, %v25_v10  ;;  %vm81_vm6 = vmand %vm79_vm15, %vm80_vm1  ;;  %vm759_vm15 = vmmov 0  }
  0x48   :  { %74 = vperm.xlu1 %591, %v49_v32   ;;  %56 = vperm.xlu0 %589, %v49_v32   ;;  %v82_v33 = vfloor.f32 %v49_v32 }
  0x4c   :  { %592 = vset.pattern.permute.xlu1 %v609_v34  ;;  %590 = vset.pattern.permute.xlu0 %v610_v35 }
  0x4d   :  { %65 = vperm.xlu0 %590, %v49_v32   ;;  %86 = vperm.xlu1 %592, %v82_v33  }
  0x51   :  { %593 = vset.pattern.permute.xlu1 %v611_v36  ;;  %594 = vset.pattern.permute.xlu0 %v611_v36 }
  0x52   :  { %98 = vperm.xlu1 %593, %v49_v32  }
  0x56   :  { %294 = vrot.lane.b32.xlu1 %v639_v2, %s616_s14 }
  0xc7   :  { %v75_v43 = vpop.permute.xlu1 %74  ;;  %v57_v44 = vpop.permute.xlu0 %56 }
  0xc8   :  { %v59_v48 = vsel %vm53_vm4, %v57_v44, 0.0  ;;  %v77_v52 = vsel %vm72_vm8, %v75_v43, 0.0  ;;  %vm479_vm8 = vcmask 64512  }
  0xcc   :  { %v66_v46 = vpop.permute.xlu0 %65  ;;  %v87_v47 = vpop.permute.xlu1 %86 }
  0xcd   :  { %v68_v49 = vsel %vm63_vm5, %v66_v46, 0.0  ;;  %vm89_vm0 = vcmp.eq.f32.partialorder %v506_v45, %v87_v47  ;;  %vm388_vm5 = vcmask 130048  }
  0xce   :  { %v69_v50 = vadd.f32 %v68_v49, %v59_v48  ;;  %vm90_vm10 = vmand %vm81_vm6, %vm89_vm0  ;;  %vm761_vm6 = vcmp.eq.f32.partialorder %v639_v2, %v639_v2 }
  0xcf   :  { %v91_v54 = vsel %vm90_vm10, 1.0, %v614_v41  ;;  %vm205_vm10 = vcmask 261120   ;;  %v518_v36 = vsel %vm761_vm6, 1.0, %v614_v41 }
  0xd0   :  { %v78_v53 = vadd.f32 %v77_v52, %v69_v50 }
  0xd1   :  { %v99_v55 = vpop.permute.xlu1 %98 }
  0xd2   :  { %v92_v56 = vadd.f32 %v91_v54, %v78_v53  ;;  %vm101_vm12 = vcmp.le.f32.partialorder %v507_v51, %v99_v55 }
  0xd3   :  { %vm102_vm13 = vmand %vm95_vm11, %vm101_vm12  ;;  %vm481_vm11 = vcmask 130112  }
  0xd4   :  { %v103_v57 = vsel %vm102_vm13, 1.0, %v614_v41  ;;  %vm487_vm13 = vcmask 162944  }
  0xd5   :  { %v104_v58 = vadd.f32 %v103_v57, %v92_v56  ;;  %v295_v8 = vpop.permute.xlu1 %294 }
  0xd7   :  { %537 = vmatmul.mubr.msk.f32.vlgmr.msra.gmra.mrb[0].mxu0 %vm112_vm14, %v104_v58  ;;  %vm492_vm14 = vcmask 195744  }
  0xd8   :  { %552 = vmatprep.mubr.msk.f32.mxu0 %vm759_vm15, %v614_v41  ;;  %551 = vmatpush3.msk.msra.mxu0 %vm760_vm2, %v311_v19 }
  0xd9   :  { %572 = vmatprep.subr.bf16.mxu0 %v612_v40  ;;  %v517_v40 = vld [vmem:[%s753_s1 + $0x4a] ss:$0 sm:$0xff] }
 0x1aa   :  { %v186_v3 = vpop.f32.mrb[0].mxu0 }
 0x1ab   :  { %v187_v4 = vadd.f32 %v508_v1, %v186_v3  ;;  %v538_v5 = vpop.f32.mrb[1].mxu0 }
 0x1ad   :  { %vm190_vm0 = vcmp.gt.f32.partialorder %v187_v4, 0.0  ;;  %v191_v6 = vmul.f32 0.01, %v187_v4  ;;  %v297_v9 = vadd.f32 %v295_v8, %v187_v4  ;;  %v282_v11 = vsel %vm281_vm7, %v187_v4, -inf }
 0x1af   :  { %v192_v7 = vsel %vm190_vm0, %v187_v4, %v191_v6  ;;  %v298_v10 = vsel %vm281_vm7, %v297_v9, -inf }
 0x1b0   :  { %203 = vrot.lane.b32.xlu0 %v192_v7, %s617_s25 }
 0x1cf   :  { %299 = vmax.xlane.f32.xlu0 %v298_v10 }
 0x1d3   :  { %283 = vmax.xlane.f32.xlu0 %v282_v11 }
 0x222   :  { %v204_v12 = vpop.permute.xlu0 %203 }
 0x223   :  { %548 = vmatmul.mubr.msk.f32.vlgmr.msra.gmra.mrb[0].mxu1 %vm205_vm10, %v204_v12 }
 0x25c   :  { %v300_v13 = vpop.xlane.xlu0 %299 }
 0x25d   :  { %vm301_vm1 = vcmp.ge.f32.partialorder %v297_v9, %v300_v13 }
 0x25e   :  { %v302_v14 = vsel %vm301_vm1, %v672_v42, 4.0 }
 0x25f   :  { %v303_v15 = vsel %vm281_vm7, %v302_v14, inf }
 0x260   :  { %304 = vmin.xlane.f32.xlu1 %v303_v15  ;;  %v284_v16 = vpop.xlane.xlu0 %283 }
 0x261   :  { %v285_v17 = vsub.f32 %v187_v4, %v284_v16 }
 0x263   :  { %v286_v18 = vmul.f32 1.442695, %v285_v17 }
 0x265   :  { %599 = vpow2.f32 %v286_v18 }
 0x26f   :  { %v600_v20 = vpop.eup %599 }
 0x270   :  { %v288_v21 = vsel %vm281_vm7, %v600_v20, 0.0 }
 0x271   :  { %289 = vadd.xlane.f32.xlu0 %v288_v21 }
 0x2ed   :  { %v305_v24 = vpop.xlane.xlu1 %304 }
 0x2ee   :  { %vm306_vm3 = vcmp.eq.f32.partialorder %v672_v42, %v305_v24 }
 0x2ef   :  { %v513_v26 = vsel %vm306_vm3, 1.0, %v614_v41 }
 0x2f0   :  { %553 = vmatmul.mubr.msk.f32.vlgmr.msra.gmra.mrb[2].mxu0 %vm281_vm7, %v513_v26  ;;  %489 = vrot.lane.b32.xlu0 %v513_v26, %s618_s4 }
 0x2f1   :  { %574 = vmatpush3.bf16.msra.mxu0 %v573_v25  ;;  %559 = vmatprep.mubr.msk.f32.mxu0 %vm759_vm15, %v614_v41  ;;  %vm500_vm15 = vcmask 236736  }
 0x2f6   :  { %v274_v28 = vpop.f32.mrb[0].mxu1 }
 0x2f7   :  { %v275_v29 = vadd.f32 %v511_v27, %v274_v28  ;;  %v549_v30 = vpop.f32.mrb[1].mxu1 }
 0x2f9   :  { %vm278_vm4 = vcmp.gt.f32.partialorder %v275_v29, 0.0  ;;  %v279_v31 = vmul.f32 0.01, %v275_v29 }
 0x2fb   :  { %v280_v32 = vsel %vm278_vm4, %v275_v29, %v279_v31 }
 0x2fc   :  { %560 = vmatmul.mubr.msk.f32.vlgmr.msra.gmra.mrb[4].mxu0 %vm388_vm5, %v280_v32 }
 0x2fe   :  { %v290_v33 = vpop.xlane.xlu0 %289 }
 0x2ff   :  { %601 = vrcp.f32 %v290_v33 }
 0x309   :  { %v602_v34 = vpop.eup %601 }
 0x30a   :  { %v292_v35 = vmul.f32 %v602_v34, %v600_v20 }
 0x30c   :  { %484 = vrot.lane.b32.xlu1 %v292_v35, %s619_s7 }
 0x310   :  { %497 = vrot.lane.b32.xlu1 %v518_v36, %s620_s8 }
 0x362   :  { %v490_v54 = vpop.permute.xlu0 %489 }
 0x37e   :  { %v485_v48 = vpop.permute.xlu1 %484 }
 0x382   :  { %v498_v53 = vpop.permute.xlu1 %497 }
 0x3c3   :  { %v384_v37 = vpop.f32.mrb[2].mxu0 }
 0x3c4   :  { %v554_v38 = vpop.f32.mrb[3].mxu0 }
 0x3cf   :  { %v458_v39 = vpop.f32.mrb[4].mxu0 }
 0x3d0   :  { %v459_v42 = vadd.f32 %v458_v39, %v384_v37  ;;  %v561_v43 = vpop.f32.mrb[5].mxu0 }
 0x3d2   :  { %v467_v44 = vadd.f32 %v517_v40, %v459_v42 }
 0x3d4   :  { %v468_v45 = vmul.f32 1.442695, %v467_v44  ;;  %480 = vst.msk [vmem:[%s754_s2] sm:$0xff] %vm479_vm8, %v467_v44 }
 0x3d6   :  { %603 = vpow2.f32 %v468_v45 }
 0x3e0   :  { %v604_v2 = vpop.eup %603 }
 0x3e1   :  { %v470_v41 = vmax.f32 %v604_v2, 1e-06 }
 0x3e3   :  { %v471_v46 = vmin.f32 %v470_v41, 1000000.0 }
 0x3e5   :  { %605 = vrsqrt.f32 %v471_v46  ;;  %vm474_vm9 = vcmp.eq.f32.partialorder %v471_v46, inf  ;;  %v477_v50 = vand.u32 2147483648, %v471_v46  ;;  %vm476_vm12 = vcmp.eq.f32.partialorder %v471_v46, 0.0 }
 0x3ef   :  { %v606_v47 = vpop.eup %605 }
 0x3f0   :  { %v473_v49 = vmul.f32 %v606_v47, %v471_v46 }
 0x3f2   :  { %v475_v51 = vsel %vm474_vm9, %v471_v46, %v473_v49 }
 0x3f3   :  { %v478_v52 = vsel %vm476_vm12, %v477_v50, %v475_v51 }
 0x3f4   :  { %482 = vst.msk [vmem:[%s754_s2] sm:$0xff] %vm481_vm11, %v478_v52 }
 0x3f5   :  { %488 = vst.msk [vmem:[%s754_s2] sm:$0xff] %vm487_vm13, %v485_v48 }
 0x3f6   :  { %493 = vst.msk [vmem:[%s754_s2] sm:$0xff] %vm492_vm14, %v490_v54 }
 0x3f7   :  { %501 = vst.msk [vmem:[%s754_s2] sm:$0xff] %vm500_vm15, %v498_v53 }

</bundles_post_ra>
